<compile_context>
chip_gen: v7x
topology: tpu7x:2x2x1
jax: 0.10.0
libtpu: 0.0.40
codegen_flags: <defaults>
</compile_context>

<pallas_src>
import math

import jax
import jax.numpy as jnp
from jax.experimental import pallas as pl
from jax.experimental.pallas import tpu as pltpu


def _encoder_kernel(in_ref, w1_ref, b1_ref, w2_ref, b2_ref, bd_ref, bias_ref,
                    x_out_ref, logits_out_ref):
    # One grid step = a tile of `bb` whole batch elements (tm = bb*d rows).
    xin = in_ref[...]                                           # (tm, n_xdims)

    # fc1 + ReLU (MXU matmul, f32 accumulate; bias/ReLU on the VPU)
    h1 = jnp.dot(xin, w1_ref[...], preferred_element_type=jnp.float32)
    h1 = jnp.maximum(h1 + b1_ref[...], 0.0)                     # (tm, n_hid)

    # fc2
    x = jnp.dot(h1, w2_ref[...], preferred_element_type=jnp.float32)
    x = x + b2_ref[...]                                         # (tm, n_out_pad)

    # Batched adjacency apply as ONE 2-D MXU matmul against the block-diagonal
    # kron(I_bb, adj_Aforz); bias_ref is the pre-tiled Wa correction term.
    logits = jnp.dot(bd_ref[...], x, preferred_element_type=jnp.float32)
    logits = logits + bias_ref[...]                             # (tm, n_out_pad)

    x_out_ref[...] = x.astype(x_out_ref.dtype)
    logits_out_ref[...] = logits.astype(logits_out_ref.dtype)


def mlp_encoder_forward(inputs, params, *, target_rows=1024):
    """inputs: [B, d, n_xdims] float32. Returns the 8-tuple like the torch module."""
    B, d, n_xdims = inputs.shape
    w1, b1, w2, b2 = params["w1"], params["b1"], params["w2"], params["b2"]
    adj_A, mask_A, Wa = params["adj_A"], params["mask_A"], params["Wa"]
    n_hid = w1.shape[1]
    n_out = w2.shape[1]

    # ---- lane-dense output padding (n_out -> multiple of 128) ----
    LANE = 128
    n_out_pad = ((n_out + LANE - 1) // LANE) * LANE
    pad = n_out_pad - n_out
    w2_p = jnp.pad(w2, ((0, 0), (0, pad)))
    b2_p = jnp.pad(b2, ((0, pad),)).reshape(1, n_out_pad)
    Wa_p = jnp.pad(Wa, ((0, pad),))
    b1_2d = b1.reshape(1, n_hid)

    # ---- batch-invariant precompute, hoisted out of the kernel ----
    adj_A1 = adj_A * mask_A
    adj_Aforz = jnp.eye(d, dtype=jnp.float32) - adj_A1.T
    # adj_Aforz @ (x + Wa) - Wa == adj_Aforz @ x + (rowsum(adj_Aforz)-1)[:,None]*Wa
    bias_corr = (jnp.sum(adj_Aforz, axis=1) - 1.0)[:, None] * Wa_p[None, :]  # (d, n_out_pad)

    # ---- fold batch into the matmul M dimension ----
    x_in = inputs.reshape(B * d, n_xdims).astype(jnp.float32)

    # Whole batch elements per grid step.  Cap tm at <=1024 so the (tm, tm) f32
    # block-diag const block stays <= 4 MiB/buffer (fits v7x's 64 MiB VMEM with
    # double buffering).  No forced multi-step split: single-TC chips gain
    # nothing, and on v7x multiple tiles appear naturally when B*d > tm.
    tm_cap = max(d, min(int(target_rows), 1024))
    bb = max(1, min(B, tm_cap // d)) if d <= tm_cap else 1
    if bb < B:
        # When splitting, keep the row-tile a multiple of 8 (sublane constraint).
        while bb > 1 and (bb * d) % 8 != 0:
            bb -= 1
        if (bb * d) % 8 != 0:
            bb = B                      # fall back to one full tile
    num_tiles = -(-B // bb)
    tm = bb * d

    # Block-diagonal adjacency + pre-tiled bias (batch-invariant, wrapper-side).
    bd_adj = jnp.kron(jnp.eye(bb, dtype=jnp.float32), adj_Aforz)   # (tm, tm)
    bias_tiled = jnp.tile(bias_corr, (bb, 1))                      # (tm, n_out_pad)

    const = lambda shape: pl.BlockSpec(shape, lambda t: (0,) * len(shape))

    x_flat, logits_flat = pl.pallas_call(
        _encoder_kernel,
        out_shape=(
            jax.ShapeDtypeStruct((B * d, n_out_pad), jnp.float32),
            jax.ShapeDtypeStruct((B * d, n_out_pad), jnp.float32),
        ),
        grid_spec=pltpu.PrefetchScalarGridSpec(
            num_scalar_prefetch=0,
            grid=(num_tiles,),
            in_specs=[
                pl.BlockSpec((tm, n_xdims), lambda t: (t, 0)),   # folded inputs
                const((n_xdims, n_hid)),                         # W1
                const((1, n_hid)),                               # b1
                const((n_hid, n_out_pad)),                       # W2 (padded)
                const((1, n_out_pad)),                           # b2 (padded)
                const((tm, tm)),                                 # block-diag adj
                const((tm, n_out_pad)),                          # tiled bias_corr
            ],
            out_specs=[
                pl.BlockSpec((tm, n_out_pad), lambda t: (t, 0)), # x
                pl.BlockSpec((tm, n_out_pad), lambda t: (t, 0)), # logits
            ],
        ),
        compiler_params=pltpu.CompilerParams(
            dimension_semantics=("parallel",),
            vmem_limit_bytes=48 * 1024 * 1024),
    )(x_in, w1, b1_2d, w2_p, b2_p, bd_adj, bias_tiled)

    x_out = x_flat[:, :n_out].reshape(B, d, n_out)
    logits = logits_flat[:, :n_out].reshape(B, d, n_out)

    adj_eye = jnp.eye(d, dtype=jnp.float32)
    return (x_out, logits, adj_A1, adj_eye,
            params["z"], params["z_positive"], adj_A, Wa)


def init_params(key, d, n_xdims, n_hid, n_out, tol=0.1):
    """Deterministic synthetic parameter init mirroring MLPEncoder.__init__."""
    k_adj, k_w1, k_w2 = jax.random.split(key, 3)
    # xavier_normal_ std = sqrt(2 / (fan_in + fan_out)); stored as [in, out].
    std1 = math.sqrt(2.0 / (n_xdims + n_hid))
    std2 = math.sqrt(2.0 / (n_hid + n_out))
    w1 = std1 * jax.random.normal(k_w1, (n_xdims, n_hid), jnp.float32)
    w2 = std2 * jax.random.normal(k_w2, (n_hid, n_out), jnp.float32)
    b1 = jnp.zeros((n_hid,), jnp.float32)
    b2 = jnp.zeros((n_out,), jnp.float32)
    adj_A = 0.1 * jax.random.normal(k_adj, (d, d), jnp.float32)
    mask_A = jnp.ones((d, d), jnp.float32) - jnp.eye(d, dtype=jnp.float32)
    Wa = jnp.zeros((n_out,), jnp.float32)
    z = jnp.float32(tol)
    z_positive = jnp.ones((d, d), jnp.float32)
    return dict(w1=w1, b1=b1, w2=w2, b2=b2, adj_A=adj_A, mask_A=mask_A,
                Wa=Wa, z=z, z_positive=z_positive)


def _reference_forward(inputs, params):
    w1, b1, w2, b2 = params["w1"], params["b1"], params["w2"], params["b2"]
    adj_A, mask_A, Wa = params["adj_A"], params["mask_A"], params["Wa"]
    d = adj_A.shape[0]
    adj_A1 = adj_A * mask_A
    adj_Aforz = jnp.eye(d, dtype=jnp.float32) - adj_A1.T
    H1 = jax.nn.relu(inputs @ w1 + b1)
    x = H1 @ w2 + b2
    logits = jnp.einsum("ij,bjk->bik", adj_Aforz, x + Wa) - Wa
    return x, logits


if __name__ == "__main__":
    B, d, n_xdims, n_hid, n_out = 2, 8, 16, 32, 16

    key = jax.random.PRNGKey(0)
    k_in, k_p, k_wa = jax.random.split(key, 3)
    inputs = jax.random.normal(k_in, (B, d, n_xdims), jnp.float32)
    params = init_params(k_p, d, n_xdims, n_hid, n_out)
    # The torch module initializes Wa to zeros; use a nonzero Wa here so the
    # hoisted Wa-correction path is actually exercised by the check.
    params["Wa"] = 0.1 * jax.random.normal(k_wa, (n_out,), jnp.float32)

    outs = jax.block_until_ready(mlp_encoder_forward(inputs, params))

    x_k, logits_k = outs[0], outs[1]
    x_ref, logits_ref = _reference_forward(inputs, params)
    assert jnp.allclose(x_k, x_ref, atol=1e-4, rtol=1e-4), "x mismatch"
    assert jnp.allclose(logits_k, logits_ref, atol=1e-4, rtol=1e-4), "logits mismatch"

    print("KERNEL_OK")
</pallas_src>

<mosaic_0001>
module attributes {stable_mosaic.version = 11 : i64} {
  func.func @_encoder_kernel(%arg0: i32, %arg1: memref<16x16xf32, #tpu.memory_space<vmem>>, %arg2: memref<16x32xf32, #tpu.memory_space<vmem>>, %arg3: memref<1x32xf32, #tpu.memory_space<vmem>>, %arg4: memref<32x128xf32, #tpu.memory_space<vmem>>, %arg5: memref<1x128xf32, #tpu.memory_space<vmem>>, %arg6: memref<16x16xf32, #tpu.memory_space<vmem>>, %arg7: memref<16x128xf32, #tpu.memory_space<vmem>>, %arg8: memref<16x128xf32, #tpu.memory_space<vmem>>, %arg9: memref<16x128xf32, #tpu.memory_space<vmem>>) attributes {dimension_semantics = [#tpu.dimension_semantics<parallel>], iteration_bounds = array<i64: 1>, scalar_prefetch = 0 : i64, scratch_operands = 0 : i64, tpu.core_type = #tpu.core_type<tc>, window_params = [{transform_indices = @transform_0, window_bounds = array<i64: 16, 16>}, {pipeline_mode = #tpu.pipeline_mode<synchronous>, transform_indices = @transform_1, window_bounds = array<i64: 16, 32>}, {pipeline_mode = #tpu.pipeline_mode<synchronous>, transform_indices = @transform_2, window_bounds = array<i64: 1, 32>}, {pipeline_mode = #tpu.pipeline_mode<synchronous>, transform_indices = @transform_3, window_bounds = array<i64: 32, 128>}, {pipeline_mode = #tpu.pipeline_mode<synchronous>, transform_indices = @transform_4, window_bounds = array<i64: 1, 128>}, {pipeline_mode = #tpu.pipeline_mode<synchronous>, transform_indices = @transform_5, window_bounds = array<i64: 16, 16>}, {pipeline_mode = #tpu.pipeline_mode<synchronous>, transform_indices = @transform_6, window_bounds = array<i64: 16, 128>}, {transform_indices = @transform_7, window_bounds = array<i64: 16, 128>}, {transform_indices = @transform_8, window_bounds = array<i64: 16, 128>}]} {
    %c0 = arith.constant 0 : index
    %c0_0 = arith.constant 0 : index
    %0 = vector.load %arg1[%c0, %c0_0] : memref<16x16xf32, #tpu.memory_space<vmem>>, vector<16x16xf32>
    %c0_1 = arith.constant 0 : index
    %c0_2 = arith.constant 0 : index
    %1 = vector.load %arg2[%c0_1, %c0_2] : memref<16x32xf32, #tpu.memory_space<vmem>>, vector<16x32xf32>
    %cst = arith.constant dense<0.000000e+00> : vector<16x32xf32>
    %2 = tpu.matmul %0, %1, %cst {dimension_numbers = #tpu.dot_dimension_numbers<[1], [0], [0], [1], [0, 0, 1, 1], [], []>} : vector<16x16xf32>, vector<16x32xf32>, vector<16x32xf32> -> vector<16x32xf32>
    %c0_3 = arith.constant 0 : index
    %c0_4 = arith.constant 0 : index
    %3 = vector.load %arg3[%c0_3, %c0_4] : memref<1x32xf32, #tpu.memory_space<vmem>>, vector<1x32xf32>
    %4 = vector.broadcast %3 : vector<1x32xf32> to vector<16x32xf32>
    %5 = arith.addf %2, %4 : vector<16x32xf32>
    %cst_5 = arith.constant 0.000000e+00 : f32
    %6 = vector.broadcast %cst_5 : f32 to vector<16x32xf32>
    %7 = arith.maximumf %5, %6 : vector<16x32xf32>
    %c0_6 = arith.constant 0 : index
    %c0_7 = arith.constant 0 : index
    %8 = vector.load %arg4[%c0_6, %c0_7] : memref<32x128xf32, #tpu.memory_space<vmem>>, vector<32x128xf32>
    %cst_8 = arith.constant dense<0.000000e+00> : vector<16x128xf32>
    %9 = tpu.matmul %7, %8, %cst_8 {dimension_numbers = #tpu.dot_dimension_numbers<[1], [0], [0], [1], [0, 0, 1, 1], [], []>} : vector<16x32xf32>, vector<32x128xf32>, vector<16x128xf32> -> vector<16x128xf32>
    %c0_9 = arith.constant 0 : index
    %c0_10 = arith.constant 0 : index
    %10 = vector.load %arg5[%c0_9, %c0_10] : memref<1x128xf32, #tpu.memory_space<vmem>>, vector<1x128xf32>
    %11 = vector.broadcast %10 : vector<1x128xf32> to vector<16x128xf32>
    %12 = arith.addf %9, %11 : vector<16x128xf32>
    %c0_11 = arith.constant 0 : index
    %c0_12 = arith.constant 0 : index
    %13 = vector.load %arg6[%c0_11, %c0_12] : memref<16x16xf32, #tpu.memory_space<vmem>>, vector<16x16xf32>
    %cst_13 = arith.constant dense<0.000000e+00> : vector<16x128xf32>
    %14 = tpu.matmul %13, %12, %cst_13 {dimension_numbers = #tpu.dot_dimension_numbers<[1], [0], [0], [1], [0, 0, 1, 1], [], []>} : vector<16x16xf32>, vector<16x128xf32>, vector<16x128xf32> -> vector<16x128xf32>
    %c0_14 = arith.constant 0 : index
    %c0_15 = arith.constant 0 : index
    %15 = vector.load %arg7[%c0_14, %c0_15] : memref<16x128xf32, #tpu.memory_space<vmem>>, vector<16x128xf32>
    %16 = arith.addf %14, %15 : vector<16x128xf32>
    %c0_16 = arith.constant 0 : index
    %c0_17 = arith.constant 0 : index
    %17 = vector.load %arg8[%c0_16, %c0_17] : memref<16x128xf32, #tpu.memory_space<vmem>>, vector<16x128xf32>
    tpu.vector_store %arg8[%c0_16, %c0_17], %12 {strides = array<i32>} : memref<16x128xf32, #tpu.memory_space<vmem>>, vector<16x128xf32>,
    %c0_18 = arith.constant 0 : index
    %c0_19 = arith.constant 0 : index
    %18 = vector.load %arg9[%c0_18, %c0_19] : memref<16x128xf32, #tpu.memory_space<vmem>>, vector<16x128xf32>
    tpu.vector_store %arg9[%c0_18, %c0_19], %16 {strides = array<i32>} : memref<16x128xf32, #tpu.memory_space<vmem>>, vector<16x128xf32>,
    return
  }
  func.func @transform_0(%arg0: i32) -> (i32, i32) {
    %c0_i32 = arith.constant 0 : i32
    %c0_i32_0 = arith.constant 0 : i32
    return %arg0, %c0_i32 : i32, i32
  }
  func.func @transform_1(%arg0: i32) -> (i32, i32) {
    %c0_i32 = arith.constant 0 : i32
    %c0_i32_0 = arith.constant 0 : i32
    %c0_i32_1 = arith.constant 0 : i32
    return %c0_i32, %c0_i32_0 : i32, i32
  }
  func.func @transform_2(%arg0: i32) -> (i32, i32) {
    %c0_i32 = arith.constant 0 : i32
    %c0_i32_0 = arith.constant 0 : i32
    %c0_i32_1 = arith.constant 0 : i32
    return %c0_i32, %c0_i32_0 : i32, i32
  }
  func.func @transform_3(%arg0: i32) -> (i32, i32) {
    %c0_i32 = arith.constant 0 : i32
    %c0_i32_0 = arith.constant 0 : i32
    %c0_i32_1 = arith.constant 0 : i32
    return %c0_i32, %c0_i32_0 : i32, i32
  }
  func.func @transform_4(%arg0: i32) -> (i32, i32) {
    %c0_i32 = arith.constant 0 : i32
    %c0_i32_0 = arith.constant 0 : i32
    %c0_i32_1 = arith.constant 0 : i32
    return %c0_i32, %c0_i32_0 : i32, i32
  }
  func.func @transform_5(%arg0: i32) -> (i32, i32) {
    %c0_i32 = arith.constant 0 : i32
    %c0_i32_0 = arith.constant 0 : i32
    %c0_i32_1 = arith.constant 0 : i32
    return %c0_i32, %c0_i32_0 : i32, i32
  }
  func.func @transform_6(%arg0: i32) -> (i32, i32) {
    %c0_i32 = arith.constant 0 : i32
    %c0_i32_0 = arith.constant 0 : i32
    %c0_i32_1 = arith.constant 0 : i32
    return %c0_i32, %c0_i32_0 : i32, i32
  }
  func.func @transform_7(%arg0: i32) -> (i32, i32) {
    %c0_i32 = arith.constant 0 : i32
    %c0_i32_0 = arith.constant 0 : i32
    return %arg0, %c0_i32 : i32, i32
  }
  func.func @transform_8(%arg0: i32) -> (i32, i32) {
    %c0_i32 = arith.constant 0 : i32
    %c0_i32_0 = arith.constant 0 : i32
    return %arg0, %c0_i32 : i32, i32
  }
}

</mosaic_0001>

<bundles_post_ra>
// kernel: tpu_custom_call.1
= control target key start
LH: loop header
LB: loop body
LE: loop exit
PB: predicated region body
PF: predicated region fallthrough
CT: control target
= control target key end

     0   :  { %14 = vsyncpa [#allocation3], 0  ;;  %s783_s0 = inlined_call_operand.hbm [shape: f32[16,16], index: 0, kind: input, shape index: {}]   ;;  %s784_s1 = inlined_call_operand.hbm [shape: f32[16,32], index: 1, kind: input, shape index: {}]   ;;  %s785_s2 = inlined_call_operand.vmem [shape: f32[1,32], index: 2, kind: input, shape index: {}]   ;;  %s786_s3 = inlined_call_operand.hbm [shape: f32[32,128], index: 3, kind: input, shape index: {}]   ;;  %s787_s4 = inlined_call_operand.vmem [shape: f32[1,128], index: 4, kind: input, shape index: {}]   ;;  %s788_s5 = inlined_call_operand.vmem [shape: f32[16,16], index: 5, kind: input, shape index: {}]   ;;  %s789_s6 = inlined_call_operand.hbm [shape: f32[16,128], index: 6, kind: input, shape index: {}]   ;;  %s790_s7 = inlined_call_operand.hbm [shape: f32[16,128], index: 7, kind: output, shape index: {0}]   ;;  %s791_s8 = inlined_call_operand.hbm [shape: f32[16,128], index: 8, kind: output, shape index: {1}]  }
   0x1   :  { %15 = vsyncpa [#allocation6], 0 }
   0x2   :  { %16 = vsyncpa [#allocation9], 0 }
   0x3   :  { %17 = vsyncpa [#allocation4], 0 }
   0x4   :  { %18 = vsyncpa [#allocation12], 0  ;;  %s610_s27 = smov [#allocation5]   ;;  %s611_s29 = smov [#allocation2]  }
   0x5   :  { %s36_s28 = sshll.u32 %s610_s27, 4  ;;  %s24_s30 = sshll.u32 %s611_s29, 4  ;;  %s37_s28 = int_to_ptr.vmem [resolvable:$true] %s36_s28  ;;  %s663_s30 = int_to_ptr.vmem [resolvable:$true] %s24_s30 }
   0x6   :  { %s468_s11 = scalar_lea.hbm %s784_s1, 256 }
   0x7   :  { %p469_p0 = scmp.ne.s32.totalorder %s784_s1, %s468_s11  ;;  %p472_p1 = scmp.lt.u32.totalorder %s468_s11, %s784_s1 }
   0x9   :  { %p474_p2 = pnand %p472_p1, %p469_p0 }
   0xb   :  { %477 = shalt.err (!%p474_p2)
}
   0xc   :  { %s478_s16 = scalar_lea.vmem %s37_s28, 256  ;;  %p483_p4 = scmp.lt.s32.totalorder %s37_s28, %s37_s28 }
   0xd   :  { %p479_p3 = scmp.ne.s32.totalorder %s37_s28, %s478_s16  ;;  %p484_p5 = scmp.lt.s32.totalorder %s478_s16, %s478_s16 }
   0xf   :  { %p485_p6 = por %p484_p5, %p483_p4 }
  0x11   :  { %p486_p7 = pnand %p485_p6, %p479_p3 }
  0x13   :  { %489 = shalt.err (!%p486_p7)
}
  0x14   :  { %s612_s17 = smov 128   ;;  %s613_s18 = smov 8  }
  0x15   :  { %42 = dma.hbm_to_vmem [thread:$0]  %s784_s1, 256, %s37_s28, [#allocation6], %s612_s17, %s612_s17, %s613_s18  }
  0x16   :  { %s490_s23 = scalar_lea.hbm %s783_s0, 256 }
  0x17   :  { %p491_p8 = scmp.ne.s32.totalorder %s783_s0, %s490_s23  ;;  %p494_p9 = scmp.lt.u32.totalorder %s490_s23, %s783_s0 }
  0x19   :  { %p496_p10 = pnand %p494_p9, %p491_p8 }
  0x1b   :  { %499 = shalt.err (!%p496_p10)
}
  0x1c   :  { %s500_s29 = scalar_lea.vmem %s663_s30, 256  ;;  %p505_p12 = scmp.lt.s32.totalorder %s663_s30, %s663_s30 }
  0x1d   :  { %p501_p11 = scmp.ne.s32.totalorder %s663_s30, %s500_s29  ;;  %p506_p13 = scmp.lt.s32.totalorder %s500_s29, %s500_s29 }
  0x1f   :  { %p507_p0 = por %p506_p13, %p505_p12 }
  0x21   :  { %p508_p1 = pnand %p507_p0, %p501_p11 }
  0x23   :  { %511 = shalt.err (!%p508_p1)
}
  0x24   :  { %30 = dma.hbm_to_vmem [thread:$0]  %s783_s0, 256, %s663_s30, [#allocation3], %s612_s17, %s612_s17, %s613_s18  }
  0x25   :  { %s614_s9 = smov [#allocation7]   ;;  %s615_s11 = smov [#allocation8]  }
  0x26   :  { %s50_s10 = sshll.u32 %s614_s9, 4  ;;  %s66_s12 = sshll.u32 %s615_s11, 4  ;;  %s51_s10 = int_to_ptr.vmem [resolvable:$true] %s50_s10  ;;  %s700_s12 = int_to_ptr.vmem [resolvable:$true] %s66_s12 }
  0x27   :  { %s512_s15 = scalar_lea.hbm %s786_s3, 512 }
  0x28   :  { %p513_p2 = scmp.ne.s32.totalorder %s786_s3, %s512_s15  ;;  %p516_p3 = scmp.lt.u32.totalorder %s512_s15, %s786_s3 }
  0x2a   :  { %p518_p4 = pnand %p516_p3, %p513_p2 }
  0x2c   :  { %521 = shalt.err (!%p518_p4)
}
  0x2d   :  { %s522_s0 = scalar_lea.vmem %s51_s10, 512  ;;  %p527_p6 = scmp.lt.s32.totalorder %s51_s10, %s51_s10 }
  0x2e   :  { %p523_p5 = scmp.ne.s32.totalorder %s51_s10, %s522_s0  ;;  %p528_p7 = scmp.lt.s32.totalorder %s522_s0, %s522_s0 }
  0x30   :  { %p529_p8 = por %p528_p7, %p527_p6 }
  0x32   :  { %p530_p9 = pnand %p529_p8, %p523_p5 }
  0x34   :  { %533 = shalt.err (!%p530_p9)
}
  0x35   :  { %56 = dma.hbm_to_vmem [thread:$0]  %s786_s3, 512, %s51_s10, [#allocation6], %s612_s17, %s612_s17, %s613_s18  }
  0x36   :  { %s534_s25 = scalar_lea.hbm %s789_s6, 256 }
  0x37   :  { %p535_p10 = scmp.ne.s32.totalorder %s789_s6, %s534_s25  ;;  %p538_p11 = scmp.lt.u32.totalorder %s534_s25, %s789_s6 }
  0x39   :  { %p540_p12 = pnand %p538_p11, %p535_p10 }
  0x3b   :  { %543 = shalt.err (!%p540_p12)
}
  0x3c   :  { %s544_s28 = scalar_lea.vmem %s700_s12, 256  ;;  %p549_p0 = scmp.lt.s32.totalorder %s700_s12, %s700_s12 }
  0x3d   :  { %p545_p13 = scmp.ne.s32.totalorder %s700_s12, %s544_s28  ;;  %p550_p1 = scmp.lt.s32.totalorder %s544_s28, %s544_s28 }
  0x3f   :  { %p551_p2 = por %p550_p1, %p549_p0 }
  0x41   :  { %p552_p3 = pnand %p551_p2, %p545_p13 }
  0x43   :  { %555 = shalt.err (!%p552_p3)
}
  0x44   :  { %72 = dma.hbm_to_vmem [thread:$0]  %s789_s6, 256, %s700_s12, [#allocation9], %s612_s17, %s612_s17, %s613_s18  }
  0x45   :  { %600 = dma.done.wait [#allocation3], 256  }
  0x46   :  { %601 = vsyncadd [#allocation3], 4294967040 }
  0x47   :  { %602 = dma.done.wait [#allocation6], 768  }
  0x48   :  { %603 = vsyncadd [#allocation6], 4294966528 }
  0x49   :  { %604 = dma.done.wait [#allocation9], 256  }
  0x4a   :  { %605 = vsyncadd [#allocation9], 4294967040  ;;  %vm96_vm0 = vcmask 130048   ;;  %v87_v0 = vld [vmem:[#allocation5] sm:$0xff]  ;;  %v88_v1 = vld [vmem:[#allocation5 + $0x8] sm:$0xff]  ;;  %vm191_vm1 = vcmask 261120  }
  0x4b   :  { %v85_v2 = vld [vmem:[#allocation2] sm:$0xff]  ;;  %v444_v3 = vpack.c.bf16 %v88_v1, %v87_v0  ;;  %v181_v5 = vld [vmem:[#allocation7 + $0x8] sm:$0xff]  ;;  %v182_v8 = vld [vmem:[#allocation7 + $0x10] sm:$0xff]  ;;  %s616_s16 = smov [#allocation10]  }
  0x4c   :  { %423 = vmatprep.mubr.msk.f32.mxu0 %vm96_vm0, %v85_v2  ;;  %v180_v4 = vld [vmem:[#allocation7] sm:$0xff]  ;;  %v86_v7 = vld [vmem:[#allocation2 + $0x8] sm:$0xff]  ;;  %v183_v9 = vld [vmem:[#allocation7 + $0x18] sm:$0xff]  ;;  %s367_s19 = sshll.u32 %s616_s16, 4  ;;  %s368_s19 = int_to_ptr.vmem [resolvable:$true] %s367_s19 }
  0x4d   :  { %v448_v6 = vpack.c.bf16 %v181_v5, %v180_v4  ;;  %445 = vmatprep.subr.bf16.mxu0 %v444_v3  ;;  %v452_v10 = vpack.c.bf16 %v183_v9, %v182_v8  ;;  %v397_v11 = vld [vmem:[%s785_s2] ss:$0 sm:$0xff]  ;;  %v274_v25 = vld [vmem:[%s788_s5 + $0x8] sm:$0xff]  ;;  %s556_s20 = scalar_lea.vmem %s368_s19, 256  ;;  %p561_p5 = scmp.lt.s32.totalorder %s368_s19, %s368_s19 }
  0x4e   :  { %447 = vmatpush3.bf16.msra.mxu0 %v444_v3  ;;  %v273_v18 = vld [vmem:[%s788_s5] sm:$0xff]  ;;  %p557_p4 = scmp.ne.s32.totalorder %s368_s19, %s556_s20  ;;  %p562_p6 = scmp.lt.s32.totalorder %s556_s20, %s556_s20 }
  0x4f   :  { %449 = vmatprep.subr.bf16.mxu1 %v448_v6  ;;  %v400_v19 = vld [vmem:[%s787_s4] ss:$0 sm:$0xff] }
  0x50   :  { %451 = vmatpush3.bf16.msra.mxu1 %v448_v6  ;;  %p563_p7 = por %p562_p6, %p561_p5 }
  0x51   :  { %424 = vmatmul.mubr.msk.f32.vlgmr.msra.gmra.mrb[0].mxu0 %vm96_vm0, %v86_v7  ;;  %453 = vmatprep.subr.bf16.mxu1 %v452_v10 }
  0x52   :  { %441 = vmatprep.mubr.msk.f32.mxu0 %vm96_vm0, %v273_v18  ;;  %p564_p8 = pnand %p563_p7, %p557_p4 }
  0x54   :  { %455 = vmatpush3.bf16.msra.mxu1 %v452_v10 }
 0x124   :  { %v425_v12 = vpop.f32.mrb[0].mxu0 }
 0x125   :  { %v175_v13 = vadd.f32 %v425_v12, %v397_v11  ;;  %v169_v14 = vpop.f32.mrb[1].mxu0 }
 0x126   :  { %v170_v15 = vadd.f32 %v397_v11, %v169_v14 }
 0x127   :  { %v179_v17 = vmax.f32 %v175_v13, 0.0 }
 0x128   :  { %v178_v16 = vmax.f32 %v170_v15, 0.0 }
 0x12a   :  { %434 = vmatprep.mubr.msk.f32.mxu1 %vm191_vm1, %v178_v16 }
 0x12b   :  { %435 = vmatmul.mubr.msk.f32.vlgmr.msra.gmra.mrb[0].mxu1 %vm191_vm1, %v179_v17 }
 0x1fe   :  { %v436_v20 = vpop.f32.mrb[0].mxu1 }
 0x1ff   :  { %v270_v21 = vadd.f32 %v436_v20, %v400_v19  ;;  %v264_v22 = vpop.f32.mrb[1].mxu1 }
 0x200   :  { %v265_v23 = vadd.f32 %v400_v19, %v264_v22 }
 0x201   :  { %359 = vst [vmem:[#allocation10 + $0x8] sm:$0xff] %v270_v21 }
 0x202   :  { %v456_v24 = vpack.c.bf16 %v270_v21, %v265_v23  ;;  %358 = vst [vmem:[#allocation10] sm:$0xff] %v265_v23 }
 0x204   :  { %457 = vmatprep.subr.bf16.mxu0 %v456_v24 }
 0x205   :  { %459 = vmatpush3.bf16.msra.mxu0 %v456_v24 }
 0x208   :  { %442 = vmatmul.mubr.msk.f32.vlgmr.msra.gmra.mrb[2].mxu0 %vm96_vm0, %v274_v25 }
 0x209   :  { %567 = shalt.err (!%p564_p8)
}
 0x20a   :  { %s568_s0 = scalar_lea.hbm %s790_s7, 256 }
 0x20b   :  { %p569_p9 = scmp.ne.s32.totalorder %s790_s7, %s568_s0  ;;  %p572_p10 = scmp.lt.u32.totalorder %s568_s0, %s790_s7 }
 0x20d   :  { %p574_p11 = pnand %p572_p10, %p569_p9 }
 0x20f   :  { %577 = shalt.err (!%p574_p11)
}
 0x210   :  { %373 = dma.vmem_to_hbm [thread:$0]  %s368_s19, 256, %s790_s7, [#allocation4], %s612_s17, %s612_s17, %s613_s18   ;;  %v276_v26 = vld [vmem:[#allocation8 + $0x8] sm:$0xff]  ;;  %v275_v27 = vld [vmem:[#allocation8] sm:$0xff] }
 0x211   :  { %s617_s26 = smov [#allocation11]  }
 0x212   :  { %s379_s27 = sshll.u32 %s617_s26, 4  ;;  %s380_s27 = int_to_ptr.vmem [resolvable:$true] %s379_s27 }
 0x213   :  { %s578_s29 = scalar_lea.vmem %s380_s27, 256  ;;  %p583_p13 = scmp.lt.s32.totalorder %s380_s27, %s380_s27 }
 0x214   :  { %p579_p12 = scmp.ne.s32.totalorder %s380_s27, %s578_s29  ;;  %p584_p0 = scmp.lt.s32.totalorder %s578_s29, %s578_s29 }
 0x216   :  { %p585_p1 = por %p584_p0, %p583_p13 }
 0x218   :  { %p586_p2 = pnand %p585_p1, %p579_p12 }
 0x2db   :  { %v443_v28 = vpop.f32.mrb[2].mxu0 }
 0x2dc   :  { %v355_v29 = vadd.f32 %v443_v28, %v276_v26  ;;  %v349_v30 = vpop.f32.mrb[3].mxu0 }
 0x2dd   :  { %v350_v31 = vadd.f32 %v349_v30, %v275_v27 }
 0x2de   :  { %361 = vst [vmem:[#allocation11 + $0x8] sm:$0xff] %v355_v29 }
 0x2df   :  { %360 = vst [vmem:[#allocation11] sm:$0xff] %v350_v31 }
 0x2e0   :  { %589 = shalt.err (!%p586_p2)
}
 0x2e1   :  { %s590_s28 = scalar_lea.hbm %s791_s8, 256 }
 0x2e2   :  { %p591_p3 = scmp.ne.s32.totalorder %s791_s8, %s590_s28  ;;  %p594_p4 = scmp.lt.u32.totalorder %s590_s28, %s791_s8 }
 0x2e4   :  { %p596_p5 = pnand %p594_p4, %p591_p3 }
 0x2e6   :  { %599 = shalt.err (!%p596_p5)
}
 0x2e7   :  { %385 = dma.vmem_to_hbm [thread:$0]  %s380_s27, 256, %s791_s8, [#allocation12], %s612_s17, %s612_s17, %s613_s18  }
 0x2e8   :  { %606 = dma.done.wait [#allocation4], 256  }
 0x2e9   :  { %607 = vsyncadd [#allocation4], 4294967040 }
 0x2ea   :  { %608 = dma.done.wait [#allocation12], 256  }
 0x2eb   :  { %609 = vsyncadd [#allocation12], 4294967040 }
 0x2ec   :  { %392 = vsyncpa [#allocation3], 1 }
 0x2ed   :  { %393 = vsyncpa [#allocation6], 1 }
 0x2ee   :  { %394 = vsyncpa [#allocation9], 1 }
 0x2ef   :  { %395 = vsyncpa [#allocation4], 1 }
 0x2f0   :  { %396 = vsyncpa [#allocation12], 1 }

</bundles_post_ra>
